<compile_context>
chip_gen: v7x
topology: tpu7x:2x2x1
jax: 0.10.0
libtpu: 0.0.40
codegen_flags: <defaults>
</compile_context>

<pallas_src>
import jax
import jax.numpy as jnp
from jax.experimental import pallas as pl
from jax.experimental.pallas import tpu as pltpu


def adapter_kernel(x_ref, w1_ref, w2_ref, o_ref):
    # x_ref:  (C_in, TILE_HW)   channels on sublanes, pixels on lanes (lane-dense)
    # w1_ref: (C_hidden, C_in)  conv1 weight (1x1 conv == channel matmul), bf16
    # w2_ref: (C_in, C_hidden)  conv2 weight, bf16
    # o_ref:  (C_in, TILE_HW)
    x = x_ref[...].astype(jnp.bfloat16)            # bf16 MXU operands, f32 accumulate
    h = jnp.dot(w1_ref[...], x, preferred_element_type=jnp.float32)
    h = jnp.maximum(h, 0.0).astype(jnp.bfloat16)   # ReLU in f32, bf16 into 2nd MXU pass
    y = jnp.dot(w2_ref[...], h, preferred_element_type=jnp.float32)
    o_ref[...] = y.astype(o_ref.dtype)


def _vmem_limit_bytes():
    """Scoped-VMEM limit with headroom under physical VMEM on every generation."""
    try:
        phys = pltpu.get_tpu_info().vmem_capacity_bytes
    except Exception:
        phys = 64 << 20  # conservative (v7x-sized) assumption
    # 40 MiB on 64 MiB chips (v7x), 48 MiB on 128 MiB chips (v5e/v6e).
    return min(48 << 20, (phys * 5) // 8)


def _pick_tile_hw(hw, n_batch, c_in, itemsize, *, block_budget_bytes):
    """Pick a lane-dense pixel tile (multiple of 128 where possible).

    Big tiles amortize the ~0.35us per-grid-step overhead; the byte budget keeps
    double-buffered in+out activation blocks (plus the f32/bf16 h intermediate)
    well under the explicit scoped-VMEM limit.  Also guarantees >= 2 grid work
    items so v7x's second TensorCore is never idle.
    """
    if hw <= 128:
        return hw                                   # full spatial extent, can't split lanes
    budget_lanes = max(128, block_budget_bytes // max(1, c_in * itemsize))
    cap = max(128, (budget_lanes // 128) * 128)
    if hw <= cap:
        tile = hw                                   # one block covers all pixels
    else:
        # Prefer an exact divisor of HW (no masked tail), but never accept a
        # divisor below cap/2 -- one masked tail block beats many tiny tiles.
        tile = cap
        for t in range(cap, cap // 2, -128):
            if hw % t == 0:
                tile = t
                break
    # Megacore: ensure at least 2 grid work items (v7x has 2 TensorCores).
    while n_batch * pl.cdiv(hw, tile) < 2 and tile > 128:
        tile = max(128, ((tile // 2 + 127) // 128) * 128)
    return tile


def adapter_forward(x_nchw, w1, w2, *, tile_hw=None, block_budget_bytes=4 << 20):
    """x_nchw: (N, C_in, H, W); w1: (C_hidden, C_in); w2: (C_in, C_hidden)."""
    N, C_in, H, W = x_nchw.shape
    C_hidden = w1.shape[0]
    assert w1.shape == (C_hidden, C_in)
    assert w2.shape == (C_in, C_hidden)

    HW = H * W
    # NCHW is already channels-major: this reshape is pure metadata, no HBM pass.
    x_cm = x_nchw.reshape(N, C_in, HW)
    itemsize = x_cm.dtype.itemsize

    if tile_hw is None:
        tile_hw = _pick_tile_hw(HW, N, C_in, itemsize,
                                block_budget_bytes=block_budget_bytes)
    num_hw_tiles = pl.cdiv(HW, tile_hw)

    # Tiny one-time cast: weights ride the MXU in bf16 and stay VMEM-resident.
    w1_b = w1.astype(jnp.bfloat16)
    w2_b = w2.astype(jnp.bfloat16)

    vmem_limit = _vmem_limit_bytes()

    # Advisory cost estimate so XLA schedules/overlaps surrounding ops.
    cost = pl.CostEstimate(
        flops=4 * N * HW * C_in * C_hidden,
        transcendentals=0,
        bytes_accessed=(2 * N * C_in * HW * itemsize
                        + 2 * C_in * C_hidden * w1_b.dtype.itemsize),
    )

    def build(use_buffered_weights):
        w_kwargs = {"pipeline_mode": pl.Buffered(1)} if use_buffered_weights else {}
        return pl.pallas_call(
            adapter_kernel,
            out_shape=jax.ShapeDtypeStruct((N, C_in, HW), x_nchw.dtype),
            grid_spec=pltpu.PrefetchScalarGridSpec(
                num_scalar_prefetch=0,
                grid=(N, num_hw_tiles),
                in_specs=[
                    # Batch dim squeezed out of the kernel view; pixels on lanes.
                    pl.BlockSpec((None, C_in, tile_hw), lambda b, t: (b, 0, t)),
                    # Weights: constant block index -> resident in VMEM; single
                    # pipeline buffer since the block never changes.
                    pl.BlockSpec((C_hidden, C_in), lambda b, t: (0, 0), **w_kwargs),
                    pl.BlockSpec((C_in, C_hidden), lambda b, t: (0, 0), **w_kwargs),
                ],
                out_specs=pl.BlockSpec((None, C_in, tile_hw), lambda b, t: (b, 0, t)),
            ),
            compiler_params=pltpu.CompilerParams(
                dimension_semantics=("parallel", "parallel"),
                vmem_limit_bytes=vmem_limit),
            cost_estimate=cost,
        )

    try:
        out_cm = build(True)(x_cm, w1_b, w2_b)
    except Exception:
        # Fallback if this build rejects pipeline_mode=pl.Buffered(1) on inputs.
        out_cm = build(False)(x_cm, w1_b, w2_b)

    # Pure-metadata reshape back to NCHW.
    return out_cm.reshape(N, C_in, H, W)


if __name__ == "__main__":
    key = jax.random.PRNGKey(0)
    k_x, k_w1, k_w2 = jax.random.split(key, 3)

    N, C_in, H, W = 2, 4, 16, 16
    C_hidden = 8

    x = jax.random.normal(k_x, (N, C_in, H, W), dtype=jnp.float32)
    # Deterministic synthetic weights (nn.Conv2d(kernel_size=1, bias=False)
    # with the trailing 1x1 spatial dims squeezed out).
    w1 = jax.random.normal(k_w1, (C_hidden, C_in), dtype=jnp.float32) * 0.1
    w2 = jax.random.normal(k_w2, (C_in, C_hidden), dtype=jnp.float32) * 0.1

    out = adapter_forward(x, w1, w2)
    jax.block_until_ready(out)

    # Pure-JAX f32 reference: 1x1 convs == per-pixel channel matmuls. The kernel
    # uses bf16 MXU operands with f32 accumulation, so tolerances are loosened.
    x_cm = x.reshape(N, C_in, H * W)
    h_ref = jnp.maximum(jnp.einsum("hc,nck->nhk", w1, x_cm), 0.0)
    ref = jnp.einsum("oh,nhk->nok", w2, h_ref).reshape(N, C_in, H, W)

    assert out.shape == (N, C_in, H, W)
    assert out.dtype == x.dtype
    assert jnp.allclose(out, ref, atol=2e-2, rtol=2e-2), float(jnp.max(jnp.abs(out - ref)))

    print("KERNEL_OK")
</pallas_src>

<mosaic_0001>
module attributes {stable_mosaic.version = 11 : i64} {
  func.func @adapter_kernel(%arg0: i32, %arg1: i32, %arg2: memref<1x4x256xf32, #tpu.memory_space<vmem>>, %arg3: memref<8x4xbf16, #tpu.memory_space<vmem>>, %arg4: memref<4x8xbf16, #tpu.memory_space<vmem>>, %arg5: memref<1x4x256xf32, #tpu.memory_space<vmem>>) attributes {dimension_semantics = [#tpu.dimension_semantics<parallel>, #tpu.dimension_semantics<parallel>], iteration_bounds = array<i64: 2, 1>, scalar_prefetch = 0 : i64, scratch_operands = 0 : i64, tpu.core_type = #tpu.core_type<tc>, window_params = [{transform_indices = @transform_0, window_bounds = array<i64: 1, 4, 256>}, {pipeline_mode = #tpu.pipeline_mode<synchronous>, transform_indices = @transform_1, window_bounds = array<i64: 8, 4>}, {pipeline_mode = #tpu.pipeline_mode<synchronous>, transform_indices = @transform_2, window_bounds = array<i64: 4, 8>}, {transform_indices = @transform_3, window_bounds = array<i64: 1, 4, 256>}]} {
    %c0 = arith.constant 0 : index
    %c0_0 = arith.constant 0 : index
    %c0_1 = arith.constant 0 : index
    %0 = vector.load %arg2[%c0, %c0_0, %c0_1] : memref<1x4x256xf32, #tpu.memory_space<vmem>>, vector<1x4x256xf32>
    %1 = vector.shape_cast %0 : vector<1x4x256xf32> to vector<4x256xf32>
    %2 = arith.truncf %1 : vector<4x256xf32> to vector<4x256xbf16>
    %c0_2 = arith.constant 0 : index
    %c0_3 = arith.constant 0 : index
    %3 = vector.load %arg3[%c0_2, %c0_3] : memref<8x4xbf16, #tpu.memory_space<vmem>>, vector<8x4xbf16>
    %cst = arith.constant dense<0.000000e+00> : vector<8x256xf32>
    %4 = tpu.matmul %3, %2, %cst {dimension_numbers = #tpu.dot_dimension_numbers<[1], [0], [0], [1], [0, 0, 1, 1], [], []>} : vector<8x4xbf16>, vector<4x256xbf16>, vector<8x256xf32> -> vector<8x256xf32>
    %cst_4 = arith.constant 0.000000e+00 : f32
    %5 = vector.broadcast %cst_4 : f32 to vector<8x256xf32>
    %6 = arith.maximumf %4, %5 : vector<8x256xf32>
    %7 = arith.truncf %6 : vector<8x256xf32> to vector<8x256xbf16>
    %c0_5 = arith.constant 0 : index
    %c0_6 = arith.constant 0 : index
    %8 = vector.load %arg4[%c0_5, %c0_6] : memref<4x8xbf16, #tpu.memory_space<vmem>>, vector<4x8xbf16>
    %cst_7 = arith.constant dense<0.000000e+00> : vector<4x256xf32>
    %9 = tpu.matmul %8, %7, %cst_7 {dimension_numbers = #tpu.dot_dimension_numbers<[1], [0], [0], [1], [0, 0, 1, 1], [], []>} : vector<4x8xbf16>, vector<8x256xbf16>, vector<4x256xf32> -> vector<4x256xf32>
    %c0_8 = arith.constant 0 : index
    %c0_9 = arith.constant 0 : index
    %c0_10 = arith.constant 0 : index
    %10 = vector.load %arg5[%c0_8, %c0_9, %c0_10] : memref<1x4x256xf32, #tpu.memory_space<vmem>>, vector<1x4x256xf32>
    %11 = vector.shape_cast %10 : vector<1x4x256xf32> to vector<4x256xf32>
    %12 = vector.shape_cast %9 : vector<4x256xf32> to vector<1x4x256xf32>
    tpu.vector_store %arg5[%c0_8, %c0_9, %c0_10], %12 {strides = array<i32>} : memref<1x4x256xf32, #tpu.memory_space<vmem>>, vector<1x4x256xf32>,
    return
  }
  func.func @transform_0(%arg0: i32, %arg1: i32) -> (i32, i32, i32) {
    %c0_i32 = arith.constant 0 : i32
    %c0_i32_0 = arith.constant 0 : i32
    return %arg0, %c0_i32, %arg1 : i32, i32, i32
  }
  func.func @transform_1(%arg0: i32, %arg1: i32) -> (i32, i32) {
    %c0_i32 = arith.constant 0 : i32
    %c0_i32_0 = arith.constant 0 : i32
    %c0_i32_1 = arith.constant 0 : i32
    return %c0_i32, %c0_i32_0 : i32, i32
  }
  func.func @transform_2(%arg0: i32, %arg1: i32) -> (i32, i32) {
    %c0_i32 = arith.constant 0 : i32
    %c0_i32_0 = arith.constant 0 : i32
    %c0_i32_1 = arith.constant 0 : i32
    return %c0_i32, %c0_i32_0 : i32, i32
  }
  func.func @transform_3(%arg0: i32, %arg1: i32) -> (i32, i32, i32) {
    %c0_i32 = arith.constant 0 : i32
    %c0_i32_0 = arith.constant 0 : i32
    return %arg0, %c0_i32, %arg1 : i32, i32, i32
  }
}

module attributes {stable_mosaic.version = 11 : i64} {
  func.func @adapter_kernel(%arg0: i32, %arg1: i32, %arg2: memref<1x4x256xf32, #tpu.memory_space<vmem>>, %arg3: memref<8x4xbf16, #tpu.memory_space<vmem>>, %arg4: memref<4x8xbf16, #tpu.memory_space<vmem>>, %arg5: memref<1x4x256xf32, #tpu.memory_space<vmem>>) attributes {dimension_semantics = [#tpu.dimension_semantics<parallel>, #tpu.dimension_semantics<parallel>], iteration_bounds = array<i64: 2, 1>, scalar_prefetch = 0 : i64, scratch_operands = 0 : i64, tpu.core_type = #tpu.core_type<tc>, window_params = [{transform_indices = @transform_0, window_bounds = array<i64: 1, 4, 256>}, {pipeline_mode = #tpu.pipeline_mode<synchronous>, transform_indices = @transform_1, window_bounds = array<i64: 8, 4>}, {pipeline_mode = #tpu.pipeline_mode<synchronous>, transform_indices = @transform_2, window_bounds = array<i64: 4, 8>}, {transform_indices = @transform_3, window_bounds = array<i64: 1, 4, 256>}]} {
    %c0 = arith.constant 0 : index
    %c0_0 = arith.constant 0 : index
    %c0_1 = arith.constant 0 : index
    %0 = vector.load %arg2[%c0, %c0_0, %c0_1] : memref<1x4x256xf32, #tpu.memory_space<vmem>>, vector<1x4x256xf32>
    %1 = vector.shape_cast %0 : vector<1x4x256xf32> to vector<4x256xf32>
    %2 = arith.truncf %1 : vector<4x256xf32> to vector<4x256xbf16>
    %c0_2 = arith.constant 0 : index
    %c0_3 = arith.constant 0 : index
    %3 = vector.load %arg3[%c0_2, %c0_3] : memref<8x4xbf16, #tpu.memory_space<vmem>>, vector<8x4xbf16>
    %cst = arith.constant dense<0.000000e+00> : vector<8x256xf32>
    %4 = tpu.matmul %3, %2, %cst {dimension_numbers = #tpu.dot_dimension_numbers<[1], [0], [0], [1], [0, 0, 1, 1], [], []>} : vector<8x4xbf16>, vector<4x256xbf16>, vector<8x256xf32> -> vector<8x256xf32>
    %cst_4 = arith.constant 0.000000e+00 : f32
    %5 = vector.broadcast %cst_4 : f32 to vector<8x256xf32>
    %6 = arith.maximumf %4, %5 : vector<8x256xf32>
    %7 = arith.truncf %6 : vector<8x256xf32> to vector<8x256xbf16>
    %c0_5 = arith.constant 0 : index
    %c0_6 = arith.constant 0 : index
    %8 = vector.load %arg4[%c0_5, %c0_6] : memref<4x8xbf16, #tpu.memory_space<vmem>>, vector<4x8xbf16>
    %cst_7 = arith.constant dense<0.000000e+00> : vector<4x256xf32>
    %9 = tpu.matmul %8, %7, %cst_7 {dimension_numbers = #tpu.dot_dimension_numbers<[1], [0], [0], [1], [0, 0, 1, 1], [], []>} : vector<4x8xbf16>, vector<8x256xbf16>, vector<4x256xf32> -> vector<4x256xf32>
    %c0_8 = arith.constant 0 : index
    %c0_9 = arith.constant 0 : index
    %c0_10 = arith.constant 0 : index
    %10 = vector.load %arg5[%c0_8, %c0_9, %c0_10] : memref<1x4x256xf32, #tpu.memory_space<vmem>>, vector<1x4x256xf32>
    %11 = vector.shape_cast %10 : vector<1x4x256xf32> to vector<4x256xf32>
    %12 = vector.shape_cast %9 : vector<4x256xf32> to vector<1x4x256xf32>
    tpu.vector_store %arg5[%c0_8, %c0_9, %c0_10], %12 {strides = array<i32>} : memref<1x4x256xf32, #tpu.memory_space<vmem>>, vector<1x4x256xf32>,
    return
  }
  func.func @transform_0(%arg0: i32, %arg1: i32) -> (i32, i32, i32) {
    %c0_i32 = arith.constant 0 : i32
    %c0_i32_0 = arith.constant 0 : i32
    return %arg0, %c0_i32, %arg1 : i32, i32, i32
  }
  func.func @transform_1(%arg0: i32, %arg1: i32) -> (i32, i32) {
    %c0_i32 = arith.constant 0 : i32
    %c0_i32_0 = arith.constant 0 : i32
    %c0_i32_1 = arith.constant 0 : i32
    return %c0_i32, %c0_i32_0 : i32, i32
  }
  func.func @transform_2(%arg0: i32, %arg1: i32) -> (i32, i32) {
    %c0_i32 = arith.constant 0 : i32
    %c0_i32_0 = arith.constant 0 : i32
    %c0_i32_1 = arith.constant 0 : i32
    return %c0_i32, %c0_i32_0 : i32, i32
  }
  func.func @transform_3(%arg0: i32, %arg1: i32) -> (i32, i32, i32) {
    %c0_i32 = arith.constant 0 : i32
    %c0_i32_0 = arith.constant 0 : i32
    return %arg0, %c0_i32, %arg1 : i32, i32, i32
  }
}

</mosaic_0001>

<bundles_post_ra>
// kernel: tpu_custom_call.1
= control target key start
LH: loop header
LB: loop body
LE: loop exit
PB: predicated region body
PF: predicated region fallthrough
CT: control target
= control target key end

     0   :  { %8 = vsyncpa [#allocation3], 0  ;;  %s834_s0 = inlined_call_operand.hbm [shape: f32[2,4,256], index: 0, kind: input, shape index: {}]   ;;  %s835_s1 = inlined_call_operand.vmem [shape: bf16[8,4], index: 1, kind: input, shape index: {}]   ;;  %s836_s2 = inlined_call_operand.vmem [shape: bf16[4,8], index: 2, kind: input, shape index: {}]   ;;  %s837_s3 = inlined_call_operand.hbm [shape: f32[2,4,256], index: 3, kind: output, shape index: {}]  }
   0x1   :  { %10 = vsyncpa [#allocation3 + $0x1], 0 }
   0x2   :  { %11 = vsyncpa [#allocation4], 0 }
   0x3   :  { %13 = vsyncpa [#allocation4 + $0x1], 0  ;;  %s652_s12 = smov 0   ;;  %s654_s13 = smov 0  }
   0x4   :  { %s656_s14 = smov 0   ;;  %s658_s15 = smov 0  }
   0x5   :  { %s660_s16 = smov 0   ;;  %s662_s17 = smov 0  }
   0x6 LB: > { %s430_s18 = sadd.s32 4294967295, %s627_s17   ;;  %s431_s19 = sadd.s32 4294967294, %s627_s17   ;;  %s627_s17 = sphi %s662_s17, %s19_s17   ;;  %s623_s16 = sphi %s660_s16, %s853_s16   ;;  %s619_s15 = sphi %s658_s15, %s852_s15   ;;  %s615_s14 = sphi %s656_s14, %s851_s14   ;;  %s611_s13 = sphi %s654_s13, %s850_s13   ;;  %s607_s12 = sphi %s652_s12, %s849_s12  }
   0x7   : > { %s31_s20 = sadd.s32 1, %s623_s16  ;;  %s40_s21 = sadd.s32 1, %s615_s14 }
   0x8   : > { %p33_p0 = scmp.ge.s32.totalorder %s31_s20, 2  ;;  %p47_p1 = scmp.ne.s32.totalorder %s615_s14, %s611_s13 }
   0x9   : > { %p48_p2 = scmp.eq.s32.totalorder %s627_s17, 0  ;;  %p53_p3 = scmp.ne.s32.totalorder %s611_s13, %s607_s12 }
   0xa   : > { %s855_s20 = smov (%p33_p0, %s31_s20), 0  ;;  %p54_p5 = scmp.eq.s32.totalorder %s430_s18, 0 }
   0xb   : > { %p693_p4 = por %p48_p2, %p47_p1  ;;  %s35_s23 = ssub.s32 %s623_s16, %s855_s20 }
   0xc   : > { %p121_p6 = scmp.eq.s32.totalorder %s430_s18, 1  ;;  %p38_p7 = scmp.eq.s32.totalorder %s35_s23, 0 }
   0xd   : > { %p699_p8 = por %p54_p5, %p53_p3  ;;  %p127_p10 = scmp.eq.s32.totalorder %s431_s19, 1 }
   0xe   : > { %p703_p9 = por %p121_p6, %p47_p1  ;;  %p463_p13 = scmp.lt.s32.totalorder %s627_s17, 2 }
   0xf   : > { %s708_s26 = scalar_select %p38_p7, %s615_s14, %s40_s21  }
  0x10   : > { %s841_s25 = scalar_select %p703_p9, 1, 0 }
  0x11   : > { %p710_p11 = por %p127_p10, %p53_p3  ;;  %s153_s28 = sand.u32 1, %s615_s14  }
  0x12   : > { %s434_s29 = sshll.u32 %s153_s28, 3  ;;  %s449_s30 = sshll.u32 %s623_s16, 7 }
  0x13   : > { %s842_s27 = scalar_select %p710_p11, 1, 0 }
  0x14   : > { %s721_s6 = scalar_lea.hbm %s834_s0, %s449_s30  ;;  %s157_s7 = scalar_lea.vmem [#allocation2], %s434_s29 }
  0x15   : > { %s167_s8 = sshll.u32 %s157_s7, 4  ;;  %p727_p0 = pnand %p463_p13, %p693_p4  ;;  %s723_s8 = int_to_ptr.vmem [resolvable:$true] %s167_s8 }
  0x16   : > { %s154_s10 = scalar_lea.sflag [#allocation3], %s153_s28  ;;  %s515_s11 = scalar_lea.hbm %s721_s6, 128 }
  0x17   : > { %p516_p3 = scmp.ne.s32.totalorder %s721_s6, %s515_s11  ;;  %p517_p5 = pneg %p727_p0 }
  0x18   : > { %s520_s21 = scalar_lea.hbm %s834_s0, 256  ;;  %p521_p4 = scmp.lt.u32.totalorder %s721_s6, %s834_s0 }
  0x19   : > { %p518_p6 = pnand %p517_p5, %p516_p3  ;;  %p522_p10 = scmp.lt.u32.totalorder %s520_s21, %s515_s11 }
  0x1a   : > { %p524_p12 = scmp.lt.u32.totalorder %s515_s11, %s721_s6 }
  0x1b   : > { %p519_p7 = pneg %p518_p6  ;;  %p523_p13 = por %p522_p10, %p521_p4 }
  0x1d   : > { %p525_p1 = por %p524_p12, %p523_p13 }
  0x1f   : > { %p526_p2 = pnand %p525_p1, %p519_p7 }
  0x21   : > { %529 = shalt.err (!%p526_p2)
}
  0x22   : > { %s530_s28 = scalar_lea.vmem %s723_s8, 128  ;;  %s629_s29 = smov [#allocation2]  }
  0x23   : > { %p531_p3 = scmp.ne.s32.totalorder %s723_s8, %s530_s28  ;;  %s535_s30 = sshll.u32 %s629_s29, 4  ;;  %s536_s30 = int_to_ptr.vmem [resolvable:$false] %s535_s30 }
  0x24   : > { %s537_s4 = scalar_lea.vmem %s536_s30, 256  ;;  %p538_p9 = scmp.lt.s32.totalorder %s723_s8, %s536_s30 }
  0x25   : > { %p533_p6 = pnand %p531_p3, %p517_p5  ;;  %p539_p4 = scmp.lt.s32.totalorder %s537_s4, %s530_s28 }
  0x27   : > { %p534_p11 = pneg %p533_p6  ;;  %p540_p10 = por %p539_p4, %p538_p9 }
  0x29   : > { %p541_p12 = pnand %p540_p10, %p534_p11 }
  0x2b   : > { %544 = shalt.err (!%p541_p12)
}
  0x2c   : > { %458 = dma.hbm_to_vmem [thread:$0]  (!%p727_p0), %s721_s6, 128, %s723_s8, %s154_s10  }
  0x2d   : > { %p844_p1 = scmp.lt.s32.totalorder %s627_s17, 3  ;;  %p845_p2 = scmp.ge.s32.totalorder %s627_s17, 1 }
  0x2f   : > { %p173_p5 = pnand %p845_p2, %p844_p1 }
  0x30   : > { %s763_s5 = sand.u32 (!%p173_p5), 1, %s611_s13  }
  0x31   : > { %176 = sbr.rel (%p173_p5) target bundleno = 516 (0x204), region = 32  ;;  %s438_s7 = sshll.u32 (!%p173_p5), %s763_s5, 3 }
  0x32   : > { %s179_s11 = scalar_lea.sflag (!%p173_p5), [#allocation3], %s763_s5  ;;  %s182_s9 = scalar_lea.vmem (!%p173_p5), [#allocation2], %s438_s7 }
  0x38   : > { %598 = dma.done.wait (%p699_p8), %s179_s11, 128  }
  0x39   : > { %600 = vsyncadd (%p699_p8), %s179_s11, 4294967168  ;;  %v630_v0 = vmov 0   ;;  %v208_v1 = vld [vmem:[%s182_s9] sm:$0xff]  ;;  %vm219_vm0 = vcmask 1041408   ;;  %vm215_vm1 = vcmask 31744   ;;  %vm276_vm2 = vcmask 1043456  }
  0x3a   : > { %258 = vmatprep.mubr.bf16.mxu0 %v630_v0  ;;  %315 = vmatprep.mubr.bf16.mxu1 %v630_v0  ;;  %v210_v2 = vcombine.high %v208_v1, %v208_v1  ;;  %v212_v3 = vpack.c.bf16 %v208_v1, %v208_v1  ;;  %v214_v6 = vld [vmem:[%s835_s1] sm:$0xf]  ;;  %vm272_vm3 = vcmask 64512   ;;  %s450_s18 = sshll.u32 %s619_s15, 7  ;;  %s204_s19 = scalar_lea.vmem [#allocation5], %s438_s7 }
  0x3b   : > { %v271_v16 = vld [vmem:[%s836_s2] sm:$0x3]  ;;  %s346_s21 = sshll.u32 %s204_s19, 4  ;;  %s785_s28 = scalar_lea.hbm %s837_s3, %s450_s18  ;;  %s787_s21 = int_to_ptr.vmem [resolvable:$true] %s346_s21 }
  0x3c   : > { %v213_v4 = vpack.c.bf16 %v210_v2, %v210_v2  ;;  %v221_v5 = vsel %vm219_vm0, %v212_v3, 0  ;;  %s330_s15 = scalar_lea.sflag [#allocation4], %s763_s5  ;;  %s545_s29 = scalar_lea.vmem %s787_s21, 128 }
  0x3d   : > { %p546_p8 = scmp.ne.s32.totalorder %s787_s21, %s545_s29  ;;  %p846_p9 = scmp.ne.s32.totalorder %s841_s25, 0 }
  0x3e   : > { %440 = vmatprep.subr.msk.bf16.mxu0 %vm219_vm0, %v213_v4  ;;  %s631_s30 = smov [#allocation5]  }
  0x3f   : > { %227 = vmatpush1.bf16.msra.mxu0 %v221_v5  ;;  %p547_p11 = pnand %p546_p8, %p846_p9  ;;  %s549_s4 = sshll.u32 %s631_s30, 4  ;;  %s550_s4 = int_to_ptr.vmem [resolvable:$false] %s549_s4 }
  0x40   : > { %s551_s7 = scalar_lea.vmem %s550_s4, 256  ;;  %p552_p7 = scmp.lt.s32.totalorder %s787_s21, %s550_s4 }
  0x41   : > { %p548_p0 = pneg %p547_p11  ;;  %p553_p13 = scmp.lt.s32.totalorder %s551_s7, %s545_s29 }
  0x42   : > { %441 = vmatmul.mubr.msk.bf16.vlgmr.msra.gmra.mrb[0].mxu0 %vm215_vm1, %v214_v6 }
  0x43   : > { %p554_p3 = por %p553_p13, %p552_p7 }
  0x45   : > { %p555_p6 = pnand %p554_p3, %p548_p0 }
 0x115   : > { %v260_v7 = vpop.f32.mrb[0].mxu0 }
 0x116   : > { %v267_v8 = vmax.f32 %v260_v7, 0.0  ;;  %v262_v9 = vpop.f32.mrb[1].mxu0 }
 0x117   : > { %v268_v10 = vmax.f32 %v262_v9, 0.0  ;;  %v264_v11 = vpop.f32.mrb[2].mxu0 }
 0x118   : > { %v269_v12 = vpack.c.bf16 %v267_v8, %v267_v8  ;;  %v265_v13 = vpop.f32.mrb[3].mxu0 }
 0x119   : > { %v270_v14 = vpack.c.bf16 %v268_v10, %v268_v10 }
 0x11a   : > { %v278_v15 = vsel %vm276_vm2, %v269_v12, 0 }
 0x11b   : > { %442 = vmatprep.subr.msk.bf16.mxu1 %vm276_vm2, %v270_v14 }
 0x11c   : > { %284 = vmatpush1.bf16.msra.mxu1 %v278_v15 }
 0x11f   : > { %443 = vmatmul.mubr.msk.bf16.vlgmr.msra.gmra.mrb[0].mxu1 %vm272_vm3, %v271_v16 }
 0x1f2   : > { %v317_v17 = vpop.f32.mrb[0].mxu1 }
 0x1f3   : > { %v319_v18 = vpop.f32.mrb[1].mxu1 }
 0x1f4   : > { %v326_v19 = vcombine.low %v317_v17, %v319_v18  ;;  %v321_v20 = vpop.f32.mrb[2].mxu1 }
 0x1f5   : > { %v322_v21 = vpop.f32.mrb[3].mxu1 }
 0x1f6   : > { %328 = vst [vmem:[%s204_s19] sm:$0xff] %v326_v19 }
 0x1f7   : > { %558 = shalt.err (!%p555_p6)
}
 0x1f8   : > { %s559_s5 = scalar_lea.hbm %s785_s28, 128  ;;  %s563_s6 = scalar_lea.hbm %s837_s3, 256 }
 0x1f9   : > { %p560_p4 = scmp.ne.s32.totalorder %s785_s28, %s559_s5  ;;  %p564_p1 = scmp.lt.u32.totalorder %s785_s28, %s837_s3 }
 0x1fa   : > { %p565_p2 = scmp.lt.u32.totalorder %s563_s6, %s559_s5  ;;  %p567_p8 = scmp.lt.u32.totalorder %s559_s5, %s785_s28 }
 0x1fb   : > { %p561_p10 = pnand %p560_p4, %p846_p9 }
 0x1fc   : > { %p566_p5 = por %p565_p2, %p564_p1 }
 0x1fd   : > { %p562_p12 = pneg %p561_p10 }
 0x1fe   : > { %p568_p11 = por %p567_p8, %p566_p5 }
 0x200   : > { %p569_p0 = pnand %p568_p11, %p562_p12 }
 0x202   : > { %572 = shalt.err (!%p569_p0)
}
 0x203   : > { %453 = dma.vmem_to_hbm [thread:$0]  (%p846_p9), %s787_s21, 128, %s785_s28, %s330_s15  }
 0x204 PF: > { %s358_s10 = sand.u32 1, %s607_s12   ;;  %p847_p7 = scmp.ne.s32.totalorder %s842_s27, 0 }
 0x205   : > { %p848_p13 = scmp.ge.s32.totalorder %s627_s17, 2  ;;  %s359_s18 = scalar_lea.sflag [#allocation4], %s358_s10 }
 0x207   : > { %p460_p3 = pnand %p848_p13, %p847_p7 }
 0x209   : > { %602 = dma.done.wait (!%p460_p3), %s359_s18, 128  }
 0x20a   : > { %604 = vsyncadd (!%p460_p3), %s359_s18, 4294967168  ;;  %s19_s17 = sadd.s32 1, %s627_s17   ;;  %s849_s12 = smov %s611_s13 }
 0x20b   : > { %p16_p6 = scmp.ge.s32.totalorder %s19_s17, 4   ;;  %s850_s13 = smov %s615_s14 }
 0x20c   : > { %s851_s14 = smov %s708_s26  ;;  %s852_s15 = smov %s623_s16 }
 0x20d   : > { %s853_s16 = smov %s855_s20  ;;  %18 = sbr.rel (!%p16_p6) target bundleno = 6 (0x6), region = 77 }
 0x214   :  { %364 = vsyncpa [#allocation3], 1 }
 0x215   :  { %366 = vsyncpa [#allocation3 + $0x1], 1 }
 0x216   :  { %367 = vsyncpa [#allocation4], 1 }
 0x217   :  { %369 = vsyncpa [#allocation4 + $0x1], 1 }

// kernel: tpu_custom_call.1
= control target key start
LH: loop header
LB: loop body
LE: loop exit
PB: predicated region body
PF: predicated region fallthrough
CT: control target
= control target key end

     0   :  { %8 = vsyncpa [#allocation3], 0  ;;  %s834_s0 = inlined_call_operand.hbm [shape: f32[2,4,256], index: 0, kind: input, shape index: {}]   ;;  %s835_s1 = inlined_call_operand.vmem [shape: bf16[8,4], index: 1, kind: input, shape index: {}]   ;;  %s836_s2 = inlined_call_operand.vmem [shape: bf16[4,8], index: 2, kind: input, shape index: {}]   ;;  %s837_s3 = inlined_call_operand.hbm [shape: f32[2,4,256], index: 3, kind: output, shape index: {}]  }
   0x1   :  { %10 = vsyncpa [#allocation3 + $0x1], 0 }
   0x2   :  { %11 = vsyncpa [#allocation4], 0 }
   0x3   :  { %13 = vsyncpa [#allocation4 + $0x1], 0  ;;  %s652_s12 = smov 0   ;;  %s654_s13 = smov 0  }
   0x4   :  { %s656_s14 = smov 0   ;;  %s658_s15 = smov 0  }
   0x5   :  { %s660_s16 = smov 0   ;;  %s662_s17 = smov 0  }
   0x6 LB: > { %s430_s18 = sadd.s32 4294967295, %s627_s17   ;;  %s431_s19 = sadd.s32 4294967294, %s627_s17   ;;  %s627_s17 = sphi %s662_s17, %s19_s17   ;;  %s623_s16 = sphi %s660_s16, %s853_s16   ;;  %s619_s15 = sphi %s658_s15, %s852_s15   ;;  %s615_s14 = sphi %s656_s14, %s851_s14   ;;  %s611_s13 = sphi %s654_s13, %s850_s13   ;;  %s607_s12 = sphi %s652_s12, %s849_s12  }
   0x7   : > { %s31_s20 = sadd.s32 1, %s623_s16  ;;  %s40_s21 = sadd.s32 1, %s615_s14 }
   0x8   : > { %p33_p0 = scmp.ge.s32.totalorder %s31_s20, 2  ;;  %p47_p1 = scmp.ne.s32.totalorder %s615_s14, %s611_s13 }
   0x9   : > { %p48_p2 = scmp.eq.s32.totalorder %s627_s17, 0  ;;  %p53_p3 = scmp.ne.s32.totalorder %s611_s13, %s607_s12 }
   0xa   : > { %s855_s20 = smov (%p33_p0, %s31_s20), 0  ;;  %p54_p5 = scmp.eq.s32.totalorder %s430_s18, 0 }
   0xb   : > { %p693_p4 = por %p48_p2, %p47_p1  ;;  %s35_s23 = ssub.s32 %s623_s16, %s855_s20 }
   0xc   : > { %p121_p6 = scmp.eq.s32.totalorder %s430_s18, 1  ;;  %p38_p7 = scmp.eq.s32.totalorder %s35_s23, 0 }
   0xd   : > { %p699_p8 = por %p54_p5, %p53_p3  ;;  %p127_p10 = scmp.eq.s32.totalorder %s431_s19, 1 }
   0xe   : > { %p703_p9 = por %p121_p6, %p47_p1  ;;  %p463_p13 = scmp.lt.s32.totalorder %s627_s17, 2 }
   0xf   : > { %s708_s26 = scalar_select %p38_p7, %s615_s14, %s40_s21  }
  0x10   : > { %s841_s25 = scalar_select %p703_p9, 1, 0 }
  0x11   : > { %p710_p11 = por %p127_p10, %p53_p3  ;;  %s153_s28 = sand.u32 1, %s615_s14  }
  0x12   : > { %s434_s29 = sshll.u32 %s153_s28, 3  ;;  %s449_s30 = sshll.u32 %s623_s16, 7 }
  0x13   : > { %s842_s27 = scalar_select %p710_p11, 1, 0 }
  0x14   : > { %s721_s6 = scalar_lea.hbm %s834_s0, %s449_s30  ;;  %s157_s7 = scalar_lea.vmem [#allocation2], %s434_s29 }
  0x15   : > { %s167_s8 = sshll.u32 %s157_s7, 4  ;;  %p727_p0 = pnand %p463_p13, %p693_p4  ;;  %s723_s8 = int_to_ptr.vmem [resolvable:$true] %s167_s8 }
  0x16   : > { %s154_s10 = scalar_lea.sflag [#allocation3], %s153_s28  ;;  %s515_s11 = scalar_lea.hbm %s721_s6, 128 }
  0x17   : > { %p516_p3 = scmp.ne.s32.totalorder %s721_s6, %s515_s11  ;;  %p517_p5 = pneg %p727_p0 }
  0x18   : > { %s520_s21 = scalar_lea.hbm %s834_s0, 256  ;;  %p521_p4 = scmp.lt.u32.totalorder %s721_s6, %s834_s0 }
  0x19   : > { %p518_p6 = pnand %p517_p5, %p516_p3  ;;  %p522_p10 = scmp.lt.u32.totalorder %s520_s21, %s515_s11 }
  0x1a   : > { %p524_p12 = scmp.lt.u32.totalorder %s515_s11, %s721_s6 }
  0x1b   : > { %p519_p7 = pneg %p518_p6  ;;  %p523_p13 = por %p522_p10, %p521_p4 }
  0x1d   : > { %p525_p1 = por %p524_p12, %p523_p13 }
  0x1f   : > { %p526_p2 = pnand %p525_p1, %p519_p7 }
  0x21   : > { %529 = shalt.err (!%p526_p2)
}
  0x22   : > { %s530_s28 = scalar_lea.vmem %s723_s8, 128  ;;  %s629_s29 = smov [#allocation2]  }
  0x23   : > { %p531_p3 = scmp.ne.s32.totalorder %s723_s8, %s530_s28  ;;  %s535_s30 = sshll.u32 %s629_s29, 4  ;;  %s536_s30 = int_to_ptr.vmem [resolvable:$false] %s535_s30 }
  0x24   : > { %s537_s4 = scalar_lea.vmem %s536_s30, 256  ;;  %p538_p9 = scmp.lt.s32.totalorder %s723_s8, %s536_s30 }
  0x25   : > { %p533_p6 = pnand %p531_p3, %p517_p5  ;;  %p539_p4 = scmp.lt.s32.totalorder %s537_s4, %s530_s28 }
  0x27   : > { %p534_p11 = pneg %p533_p6  ;;  %p540_p10 = por %p539_p4, %p538_p9 }
  0x29   : > { %p541_p12 = pnand %p540_p10, %p534_p11 }
  0x2b   : > { %544 = shalt.err (!%p541_p12)
}
  0x2c   : > { %458 = dma.hbm_to_vmem [thread:$0]  (!%p727_p0), %s721_s6, 128, %s723_s8, %s154_s10  }
  0x2d   : > { %p844_p1 = scmp.lt.s32.totalorder %s627_s17, 3  ;;  %p845_p2 = scmp.ge.s32.totalorder %s627_s17, 1 }
  0x2f   : > { %p173_p5 = pnand %p845_p2, %p844_p1 }
  0x30   : > { %s763_s5 = sand.u32 (!%p173_p5), 1, %s611_s13  }
  0x31   : > { %176 = sbr.rel (%p173_p5) target bundleno = 516 (0x204), region = 32  ;;  %s438_s7 = sshll.u32 (!%p173_p5), %s763_s5, 3 }
  0x32   : > { %s179_s11 = scalar_lea.sflag (!%p173_p5), [#allocation3], %s763_s5  ;;  %s182_s9 = scalar_lea.vmem (!%p173_p5), [#allocation2], %s438_s7 }
  0x38   : > { %598 = dma.done.wait (%p699_p8), %s179_s11, 128  }
  0x39   : > { %600 = vsyncadd (%p699_p8), %s179_s11, 4294967168  ;;  %v630_v0 = vmov 0   ;;  %v208_v1 = vld [vmem:[%s182_s9] sm:$0xff]  ;;  %vm219_vm0 = vcmask 1041408   ;;  %vm215_vm1 = vcmask 31744   ;;  %vm276_vm2 = vcmask 1043456  }
  0x3a   : > { %258 = vmatprep.mubr.bf16.mxu0 %v630_v0  ;;  %315 = vmatprep.mubr.bf16.mxu1 %v630_v0  ;;  %v210_v2 = vcombine.high %v208_v1, %v208_v1  ;;  %v212_v3 = vpack.c.bf16 %v208_v1, %v208_v1  ;;  %v214_v6 = vld [vmem:[%s835_s1] sm:$0xf]  ;;  %vm272_vm3 = vcmask 64512   ;;  %s450_s18 = sshll.u32 %s619_s15, 7  ;;  %s204_s19 = scalar_lea.vmem [#allocation5], %s438_s7 }
  0x3b   : > { %v271_v16 = vld [vmem:[%s836_s2] sm:$0x3]  ;;  %s346_s21 = sshll.u32 %s204_s19, 4  ;;  %s785_s28 = scalar_lea.hbm %s837_s3, %s450_s18  ;;  %s787_s21 = int_to_ptr.vmem [resolvable:$true] %s346_s21 }
  0x3c   : > { %v213_v4 = vpack.c.bf16 %v210_v2, %v210_v2  ;;  %v221_v5 = vsel %vm219_vm0, %v212_v3, 0  ;;  %s330_s15 = scalar_lea.sflag [#allocation4], %s763_s5  ;;  %s545_s29 = scalar_lea.vmem %s787_s21, 128 }
  0x3d   : > { %p546_p8 = scmp.ne.s32.totalorder %s787_s21, %s545_s29  ;;  %p846_p9 = scmp.ne.s32.totalorder %s841_s25, 0 }
  0x3e   : > { %440 = vmatprep.subr.msk.bf16.mxu0 %vm219_vm0, %v213_v4  ;;  %s631_s30 = smov [#allocation5]  }
  0x3f   : > { %227 = vmatpush1.bf16.msra.mxu0 %v221_v5  ;;  %p547_p11 = pnand %p546_p8, %p846_p9  ;;  %s549_s4 = sshll.u32 %s631_s30, 4  ;;  %s550_s4 = int_to_ptr.vmem [resolvable:$false] %s549_s4 }
  0x40   : > { %s551_s7 = scalar_lea.vmem %s550_s4, 256  ;;  %p552_p7 = scmp.lt.s32.totalorder %s787_s21, %s550_s4 }
  0x41   : > { %p548_p0 = pneg %p547_p11  ;;  %p553_p13 = scmp.lt.s32.totalorder %s551_s7, %s545_s29 }
  0x42   : > { %441 = vmatmul.mubr.msk.bf16.vlgmr.msra.gmra.mrb[0].mxu0 %vm215_vm1, %v214_v6 }
  0x43   : > { %p554_p3 = por %p553_p13, %p552_p7 }
  0x45   : > { %p555_p6 = pnand %p554_p3, %p548_p0 }
 0x115   : > { %v260_v7 = vpop.f32.mrb[0].mxu0 }
 0x116   : > { %v267_v8 = vmax.f32 %v260_v7, 0.0  ;;  %v262_v9 = vpop.f32.mrb[1].mxu0 }
 0x117   : > { %v268_v10 = vmax.f32 %v262_v9, 0.0  ;;  %v264_v11 = vpop.f32.mrb[2].mxu0 }
 0x118   : > { %v269_v12 = vpack.c.bf16 %v267_v8, %v267_v8  ;;  %v265_v13 = vpop.f32.mrb[3].mxu0 }
 0x119   : > { %v270_v14 = vpack.c.bf16 %v268_v10, %v268_v10 }
 0x11a   : > { %v278_v15 = vsel %vm276_vm2, %v269_v12, 0 }
 0x11b   : > { %442 = vmatprep.subr.msk.bf16.mxu1 %vm276_vm2, %v270_v14 }
 0x11c   : > { %284 = vmatpush1.bf16.msra.mxu1 %v278_v15 }
 0x11f   : > { %443 = vmatmul.mubr.msk.bf16.vlgmr.msra.gmra.mrb[0].mxu1 %vm272_vm3, %v271_v16 }
 0x1f2   : > { %v317_v17 = vpop.f32.mrb[0].mxu1 }
 0x1f3   : > { %v319_v18 = vpop.f32.mrb[1].mxu1 }
 0x1f4   : > { %v326_v19 = vcombine.low %v317_v17, %v319_v18  ;;  %v321_v20 = vpop.f32.mrb[2].mxu1 }
 0x1f5   : > { %v322_v21 = vpop.f32.mrb[3].mxu1 }
 0x1f6   : > { %328 = vst [vmem:[%s204_s19] sm:$0xff] %v326_v19 }
 0x1f7   : > { %558 = shalt.err (!%p555_p6)
}
 0x1f8   : > { %s559_s5 = scalar_lea.hbm %s785_s28, 128  ;;  %s563_s6 = scalar_lea.hbm %s837_s3, 256 }
 0x1f9   : > { %p560_p4 = scmp.ne.s32.totalorder %s785_s28, %s559_s5  ;;  %p564_p1 = scmp.lt.u32.totalorder %s785_s28, %s837_s3 }
 0x1fa   : > { %p565_p2 = scmp.lt.u32.totalorder %s563_s6, %s559_s5  ;;  %p567_p8 = scmp.lt.u32.totalorder %s559_s5, %s785_s28 }
 0x1fb   : > { %p561_p10 = pnand %p560_p4, %p846_p9 }
 0x1fc   : > { %p566_p5 = por %p565_p2, %p564_p1 }
 0x1fd   : > { %p562_p12 = pneg %p561_p10 }
 0x1fe   : > { %p568_p11 = por %p567_p8, %p566_p5 }
 0x200   : > { %p569_p0 = pnand %p568_p11, %p562_p12 }
 0x202   : > { %572 = shalt.err (!%p569_p0)
}
 0x203   : > { %453 = dma.vmem_to_hbm [thread:$0]  (%p846_p9), %s787_s21, 128, %s785_s28, %s330_s15  }
 0x204 PF: > { %s358_s10 = sand.u32 1, %s607_s12   ;;  %p847_p7 = scmp.ne.s32.totalorder %s842_s27, 0 }
 0x205   : > { %p848_p13 = scmp.ge.s32.totalorder %s627_s17, 2  ;;  %s359_s18 = scalar_lea.sflag [#allocation4], %s358_s10 }
 0x207   : > { %p460_p3 = pnand %p848_p13, %p847_p7 }
 0x209   : > { %602 = dma.done.wait (!%p460_p3), %s359_s18, 128  }
 0x20a   : > { %604 = vsyncadd (!%p460_p3), %s359_s18, 4294967168  ;;  %s19_s17 = sadd.s32 1, %s627_s17   ;;  %s849_s12 = smov %s611_s13 }
 0x20b   : > { %p16_p6 = scmp.ge.s32.totalorder %s19_s17, 4   ;;  %s850_s13 = smov %s615_s14 }
 0x20c   : > { %s851_s14 = smov %s708_s26  ;;  %s852_s15 = smov %s623_s16 }
 0x20d   : > { %s853_s16 = smov %s855_s20  ;;  %18 = sbr.rel (!%p16_p6) target bundleno = 6 (0x6), region = 77 }
 0x214   :  { %364 = vsyncpa [#allocation3], 1 }
 0x215   :  { %366 = vsyncpa [#allocation3 + $0x1], 1 }
 0x216   :  { %367 = vsyncpa [#allocation4], 1 }
 0x217   :  { %369 = vsyncpa [#allocation4 + $0x1], 1 }

</bundles_post_ra>
